<compile_context>
chip_gen: v5e
topology: v5e:2x2
jax: 0.10.0
libtpu: 0.0.40
codegen_flags: <defaults>
</compile_context>

<pallas_src>
import functools
import math

import jax
import jax.numpy as jnp
from jax.experimental import pallas as pl
from jax.experimental.pallas import tpu as pltpu


# ------------------------------ kernel ------------------------------------ #

def old_dynamics_kernel(x_ref,
                        w1_ref, b1_ref,
                        w2_ref, b2_ref,
                        w3_ref, b3_ref,
                        w4_ref, b4_ref,
                        o_ref, *, hidden_bf16):
    """tanh(L1)->tanh(L2)->tanh(L3)->L4. bf16 MXU operands, f32 accumulation.

    hidden_bf16=True  (v6e/v7x): hidden bias-add + tanh in bf16 (bf16 EUP path).
    hidden_bf16=False (v5e):     hidden bias-add + tanh in f32, cast to bf16 after.
    """

    def hidden_layer(x, w_ref, b_ref):
        acc = jnp.dot(x, w_ref[...], preferred_element_type=jnp.float32)
        if hidden_bf16:
            return jnp.tanh(acc.astype(jnp.bfloat16) + b_ref[...])
        return jnp.tanh(acc + b_ref[...]).astype(jnp.bfloat16)

    h = hidden_layer(x_ref[...], w1_ref, b1_ref)
    h = hidden_layer(h, w2_ref, b2_ref)
    h = hidden_layer(h, w3_ref, b3_ref)

    out = jnp.dot(h, w4_ref[...], preferred_element_type=jnp.float32) + b4_ref[...]
    o_ref[...] = out.astype(o_ref.dtype)


# ------------------------------ helpers ------------------------------------ #

def _round_up(n, m):
    return ((n + m - 1) // m) * m


def _pad_to(a, shape):
    pads = [(0, t - s) for s, t in zip(a.shape, shape)]
    return jnp.pad(a, pads)


def _device_kind():
    try:
        return jax.devices()[0].device_kind.lower()
    except Exception:
        return ""


def _default_hidden_bf16():
    # bf16 VPU/EUP exist on v6e/v7x; v5e (and older) keep the f32 elementwise path.
    k = _device_kind()
    return ("v6" in k) or ("v7" in k)


def _has_two_tensorcores():
    # v7x has 2 TensorCores per chip; earlier gens have 1.
    return "v7" in _device_kind()


# ------------------------------ param prep (once) --------------------------- #

def prepare_params(params, *, hidden_bf16=None):
    """Pads feature dims to lane multiples and casts weights to bf16 ONCE.

    Do this at init time, not per forward call. Zero-padded weight/bias lanes
    contribute exactly 0, so the padded matmuls are exact on the real lanes.
    """
    if hidden_bf16 is None:
        hidden_bf16 = _default_hidden_bf16()

    (w1, b1), (w2, b2), (w3, b3), (w4, b4) = params
    in_dim, hidden = w1.shape
    out_dim = w4.shape[1]

    in_p = _round_up(in_dim, 128)     # 23  -> 128
    hid_p = _round_up(hidden, 128)    # 250 -> 256
    out_p = _round_up(out_dim, 128)   # 34  -> 128

    hb_dtype = jnp.bfloat16 if hidden_bf16 else jnp.float32

    return dict(
        w1=_pad_to(w1, (in_p, hid_p)).astype(jnp.bfloat16),
        b1=_pad_to(b1, (1, hid_p)).astype(hb_dtype),
        w2=_pad_to(w2, (hid_p, hid_p)).astype(jnp.bfloat16),
        b2=_pad_to(b2, (1, hid_p)).astype(hb_dtype),
        w3=_pad_to(w3, (hid_p, hid_p)).astype(jnp.bfloat16),
        b3=_pad_to(b3, (1, hid_p)).astype(hb_dtype),
        w4=_pad_to(w4, (hid_p, out_p)).astype(jnp.bfloat16),
        b4=_pad_to(b4, (1, out_p)).astype(jnp.float32),
        dims=(in_dim, hidden, out_dim, in_p, hid_p, out_p),
        hidden_bf16=hidden_bf16,
    )


# ------------------------------ forward ------------------------------------- #

def old_dynamics_forward(obs, prepared, *, block_batch=1024):
    """Runs the padded, batch-gridded Pallas kernel and slices the result back."""
    in_dim, hidden, out_dim, in_p, hid_p, out_p = prepared["dims"]
    hidden_bf16 = prepared["hidden_bf16"]

    batch = obs.shape[0]
    assert obs.shape[1] == in_dim

    # Batch tile: multiple of 8 sublanes; large to amortize per-step overhead.
    tb = min(block_batch, _round_up(batch, 8))
    # v7x megacore: ensure >=2 grid steps so the "parallel" axis shards across both TCs.
    if _has_two_tensorcores() and batch >= 16 and _round_up(batch, tb) // tb < 2:
        tb = _round_up(pl.cdiv(_round_up(batch, 8), 2), 8)
    b_pad = _round_up(batch, tb)
    grid = (b_pad // tb,)

    # bf16 activations: half the activation HBM->VMEM traffic, no in-kernel cast.
    # (Kernel result unchanged: MXU operands were already bf16.)
    obs_p = _pad_to(obs.astype(jnp.bfloat16), (b_pad, in_p))
    # TODO(synk): for very large batches, skip the 23->128 HBM pad of obs (pass
    # (tb, 23) blocks and zero-fill a VMEM scratch) if the x-stream DMA shows up
    # as exposed in traces.

    x_spec = pl.BlockSpec((tb, in_p), lambda i: (i, 0))
    w_spec = lambda r, c: pl.BlockSpec((r, c), lambda i: (0, 0))   # resident weights
    b_spec = lambda c: pl.BlockSpec((1, c), lambda i: (0, 0))      # resident biases
    o_spec = pl.BlockSpec((tb, out_p), lambda i: (i, 0))

    w_bytes = 2 * (in_p * hid_p + 2 * hid_p * hid_p + hid_p * out_p)
    b_bytes = (3 * hid_p + out_p) * (2 if hidden_bf16 else 4)
    flops = 2 * b_pad * (in_p * hid_p + 2 * hid_p * hid_p + hid_p * out_p)
    transcendentals = 3 * b_pad * hid_p
    bytes_accessed = obs_p.size * 2 + w_bytes + b_bytes + b_pad * out_p * 4

    # Explicit VMEM budget only when the tile is big enough to need it
    # (v5e default scoped limit is 16 MiB). Capped at v7x's 64 MiB physical.
    vmem_est = (
        2 * tb * in_p * 2           # x tile, double-buffered, bf16
        + 2 * tb * out_p * 4        # out tile, double-buffered, f32
        + 2 * (w_bytes + b_bytes)   # weights/biases (worst-case 2 buffers)
        + 8 * tb * hid_p * 4        # intermediates / headroom
    )
    vmem_limit = None
    if vmem_est > 12 * 1024 * 1024:
        vmem_limit = int(min(max(2 * vmem_est, 32 * 1024 * 1024), 64 * 1024 * 1024))

    kernel = functools.partial(old_dynamics_kernel, hidden_bf16=hidden_bf16)

    out_padded = pl.pallas_call(
        kernel,
        out_shape=jax.ShapeDtypeStruct((b_pad, out_p), jnp.float32),
        grid=grid,
        in_specs=[
            x_spec,
            w_spec(in_p, hid_p), b_spec(hid_p),
            w_spec(hid_p, hid_p), b_spec(hid_p),
            w_spec(hid_p, hid_p), b_spec(hid_p),
            w_spec(hid_p, out_p), b_spec(out_p),
        ],
        out_specs=o_spec,
        compiler_params=pltpu.CompilerParams(
            dimension_semantics=("parallel",),
            vmem_limit_bytes=vmem_limit),
        cost_estimate=pl.CostEstimate(
            flops=flops,
            transcendentals=transcendentals,
            bytes_accessed=bytes_accessed),
    )(obs_p,
      prepared["w1"], prepared["b1"],
      prepared["w2"], prepared["b2"],
      prepared["w3"], prepared["b3"],
      prepared["w4"], prepared["b4"])

    return out_padded[:batch, :out_dim]


# ------------------------------ reference ---------------------------------- #

def init_params(key, in_dim, hidden, out_dim):
    """Deterministic synthetic parameter init (PyTorch-Linear-like uniform)."""
    def linear(k, fan_in, fan_out):
        kw, kb = jax.random.split(k)
        bound = 1.0 / math.sqrt(float(fan_in))
        # Stored transposed relative to torch: (in, out).
        w = jax.random.uniform(kw, (fan_in, fan_out), jnp.float32, -bound, bound)
        b = jax.random.uniform(kb, (1, fan_out), jnp.float32, -bound, bound)
        return w, b

    k1, k2, k3, k4 = jax.random.split(key, 4)
    return (
        linear(k1, in_dim, hidden),
        linear(k2, hidden, hidden),
        linear(k3, hidden, hidden),
        linear(k4, hidden, out_dim),
    )


def reference_forward(obs, params):
    """Pure-JAX f32 reference of OldDynamics.forward."""
    (w1, b1), (w2, b2), (w3, b3), (w4, b4) = params
    x = jnp.tanh(obs @ w1 + b1)
    x = jnp.tanh(x @ w2 + b2)
    x = jnp.tanh(x @ w3 + b3)
    return x @ w4 + b4


# ------------------------------ main ---------------------------------------- #

if __name__ == "__main__":
    # Module config: state_shape=(17,), action_shape=(6,), stack_n=1, stochastic=True.
    state_shape = 17
    action_shape = 6
    stack_n = 1
    stochastic = True

    in_dim = (state_shape + action_shape) * stack_n           # 23
    hidden = 250                                               # fixed by the module
    out_dim = state_shape * (2 if stochastic else 1)           # 34
    batch = 8

    key = jax.random.PRNGKey(0)
    k_obs, k_params = jax.random.split(key)

    obs = jax.random.normal(k_obs, (batch, in_dim), dtype=jnp.float32)
    params = init_params(k_params, in_dim, hidden, out_dim)

    # Pad + cast weights ONCE (init time), reuse for every forward call.
    prepared = prepare_params(params)

    out = old_dynamics_forward(obs, prepared)
    out = jax.block_until_ready(out)

    ref = reference_forward(obs, params)
    assert out.shape == (batch, out_dim)
    # bf16 matmul operands (and bf16 tanh on v6e/v7x): loose tolerance vs f32 ref.
    assert jnp.allclose(out, ref, atol=5e-2, rtol=5e-2), "mismatch vs reference"

    print("KERNEL_OK")
</pallas_src>

<mosaic_0001>
module attributes {stable_mosaic.version = 11 : i64} {
  func.func @old_dynamics_kernel(%arg0: i32, %arg1: memref<8x128xbf16, #tpu.memory_space<vmem>>, %arg2: memref<128x256xbf16, #tpu.memory_space<vmem>>, %arg3: memref<1x256xf32, #tpu.memory_space<vmem>>, %arg4: memref<256x256xbf16, #tpu.memory_space<vmem>>, %arg5: memref<1x256xf32, #tpu.memory_space<vmem>>, %arg6: memref<256x256xbf16, #tpu.memory_space<vmem>>, %arg7: memref<1x256xf32, #tpu.memory_space<vmem>>, %arg8: memref<256x128xbf16, #tpu.memory_space<vmem>>, %arg9: memref<1x128xf32, #tpu.memory_space<vmem>>, %arg10: memref<8x128xf32, #tpu.memory_space<vmem>>) attributes {dimension_semantics = [#tpu.dimension_semantics<parallel>], iteration_bounds = array<i64: 1>, scalar_prefetch = 0 : i64, scratch_operands = 0 : i64, tpu.core_type = #tpu.core_type<tc>, window_params = [{transform_indices = @transform_0, window_bounds = array<i64: 8, 128>}, {pipeline_mode = #tpu.pipeline_mode<synchronous>, transform_indices = @transform_1, window_bounds = array<i64: 128, 256>}, {pipeline_mode = #tpu.pipeline_mode<synchronous>, transform_indices = @transform_2, window_bounds = array<i64: 1, 256>}, {pipeline_mode = #tpu.pipeline_mode<synchronous>, transform_indices = @transform_3, window_bounds = array<i64: 256, 256>}, {pipeline_mode = #tpu.pipeline_mode<synchronous>, transform_indices = @transform_4, window_bounds = array<i64: 1, 256>}, {pipeline_mode = #tpu.pipeline_mode<synchronous>, transform_indices = @transform_5, window_bounds = array<i64: 256, 256>}, {pipeline_mode = #tpu.pipeline_mode<synchronous>, transform_indices = @transform_6, window_bounds = array<i64: 1, 256>}, {pipeline_mode = #tpu.pipeline_mode<synchronous>, transform_indices = @transform_7, window_bounds = array<i64: 256, 128>}, {pipeline_mode = #tpu.pipeline_mode<synchronous>, transform_indices = @transform_8, window_bounds = array<i64: 1, 128>}, {transform_indices = @transform_9, window_bounds = array<i64: 8, 128>}]} {
    %c0 = arith.constant 0 : index
    %c0_0 = arith.constant 0 : index
    %0 = vector.load %arg1[%c0, %c0_0] : memref<8x128xbf16, #tpu.memory_space<vmem>>, vector<8x128xbf16>
    %c0_1 = arith.constant 0 : index
    %c0_2 = arith.constant 0 : index
    %1 = vector.load %arg2[%c0_1, %c0_2] : memref<128x256xbf16, #tpu.memory_space<vmem>>, vector<128x256xbf16>
    %cst = arith.constant dense<0.000000e+00> : vector<8x256xf32>
    %2 = tpu.matmul %0, %1, %cst {dimension_numbers = #tpu.dot_dimension_numbers<[1], [0], [0], [1], [0, 0, 1, 1], [], []>} : vector<8x128xbf16>, vector<128x256xbf16>, vector<8x256xf32> -> vector<8x256xf32>
    %c0_3 = arith.constant 0 : index
    %c0_4 = arith.constant 0 : index
    %3 = vector.load %arg3[%c0_3, %c0_4] : memref<1x256xf32, #tpu.memory_space<vmem>>, vector<1x256xf32>
    %4 = vector.broadcast %3 : vector<1x256xf32> to vector<8x256xf32>
    %5 = arith.addf %2, %4 : vector<8x256xf32>
    %6 = math.tanh %5 : vector<8x256xf32>
    %7 = arith.truncf %6 : vector<8x256xf32> to vector<8x256xbf16>
    %c0_5 = arith.constant 0 : index
    %c0_6 = arith.constant 0 : index
    %8 = vector.load %arg4[%c0_5, %c0_6] : memref<256x256xbf16, #tpu.memory_space<vmem>>, vector<256x256xbf16>
    %cst_7 = arith.constant dense<0.000000e+00> : vector<8x256xf32>
    %9 = tpu.matmul %7, %8, %cst_7 {dimension_numbers = #tpu.dot_dimension_numbers<[1], [0], [0], [1], [0, 0, 1, 1], [], []>} : vector<8x256xbf16>, vector<256x256xbf16>, vector<8x256xf32> -> vector<8x256xf32>
    %c0_8 = arith.constant 0 : index
    %c0_9 = arith.constant 0 : index
    %10 = vector.load %arg5[%c0_8, %c0_9] : memref<1x256xf32, #tpu.memory_space<vmem>>, vector<1x256xf32>
    %11 = vector.broadcast %10 : vector<1x256xf32> to vector<8x256xf32>
    %12 = arith.addf %9, %11 : vector<8x256xf32>
    %13 = math.tanh %12 : vector<8x256xf32>
    %14 = arith.truncf %13 : vector<8x256xf32> to vector<8x256xbf16>
    %c0_10 = arith.constant 0 : index
    %c0_11 = arith.constant 0 : index
    %15 = vector.load %arg6[%c0_10, %c0_11] : memref<256x256xbf16, #tpu.memory_space<vmem>>, vector<256x256xbf16>
    %cst_12 = arith.constant dense<0.000000e+00> : vector<8x256xf32>
    %16 = tpu.matmul %14, %15, %cst_12 {dimension_numbers = #tpu.dot_dimension_numbers<[1], [0], [0], [1], [0, 0, 1, 1], [], []>} : vector<8x256xbf16>, vector<256x256xbf16>, vector<8x256xf32> -> vector<8x256xf32>
    %c0_13 = arith.constant 0 : index
    %c0_14 = arith.constant 0 : index
    %17 = vector.load %arg7[%c0_13, %c0_14] : memref<1x256xf32, #tpu.memory_space<vmem>>, vector<1x256xf32>
    %18 = vector.broadcast %17 : vector<1x256xf32> to vector<8x256xf32>
    %19 = arith.addf %16, %18 : vector<8x256xf32>
    %20 = math.tanh %19 : vector<8x256xf32>
    %21 = arith.truncf %20 : vector<8x256xf32> to vector<8x256xbf16>
    %c0_15 = arith.constant 0 : index
    %c0_16 = arith.constant 0 : index
    %22 = vector.load %arg8[%c0_15, %c0_16] : memref<256x128xbf16, #tpu.memory_space<vmem>>, vector<256x128xbf16>
    %cst_17 = arith.constant dense<0.000000e+00> : vector<8x128xf32>
    %23 = tpu.matmul %21, %22, %cst_17 {dimension_numbers = #tpu.dot_dimension_numbers<[1], [0], [0], [1], [0, 0, 1, 1], [], []>} : vector<8x256xbf16>, vector<256x128xbf16>, vector<8x128xf32> -> vector<8x128xf32>
    %c0_18 = arith.constant 0 : index
    %c0_19 = arith.constant 0 : index
    %24 = vector.load %arg9[%c0_18, %c0_19] : memref<1x128xf32, #tpu.memory_space<vmem>>, vector<1x128xf32>
    %25 = vector.broadcast %24 : vector<1x128xf32> to vector<8x128xf32>
    %26 = arith.addf %23, %25 : vector<8x128xf32>
    %c0_20 = arith.constant 0 : index
    %c0_21 = arith.constant 0 : index
    %27 = vector.load %arg10[%c0_20, %c0_21] : memref<8x128xf32, #tpu.memory_space<vmem>>, vector<8x128xf32>
    tpu.vector_store %arg10[%c0_20, %c0_21], %26 {strides = array<i32>} : memref<8x128xf32, #tpu.memory_space<vmem>>, vector<8x128xf32>,
    return
  }
  func.func @transform_0(%arg0: i32) -> (i32, i32) {
    %c0_i32 = arith.constant 0 : i32
    %c0_i32_0 = arith.constant 0 : i32
    return %arg0, %c0_i32 : i32, i32
  }
  func.func @transform_1(%arg0: i32) -> (i32, i32) {
    %c0_i32 = arith.constant 0 : i32
    %c0_i32_0 = arith.constant 0 : i32
    %c0_i32_1 = arith.constant 0 : i32
    return %c0_i32, %c0_i32_0 : i32, i32
  }
  func.func @transform_2(%arg0: i32) -> (i32, i32) {
    %c0_i32 = arith.constant 0 : i32
    %c0_i32_0 = arith.constant 0 : i32
    %c0_i32_1 = arith.constant 0 : i32
    return %c0_i32, %c0_i32_0 : i32, i32
  }
  func.func @transform_3(%arg0: i32) -> (i32, i32) {
    %c0_i32 = arith.constant 0 : i32
    %c0_i32_0 = arith.constant 0 : i32
    %c0_i32_1 = arith.constant 0 : i32
    return %c0_i32, %c0_i32_0 : i32, i32
  }
  func.func @transform_4(%arg0: i32) -> (i32, i32) {
    %c0_i32 = arith.constant 0 : i32
    %c0_i32_0 = arith.constant 0 : i32
    %c0_i32_1 = arith.constant 0 : i32
    return %c0_i32, %c0_i32_0 : i32, i32
  }
  func.func @transform_5(%arg0: i32) -> (i32, i32) {
    %c0_i32 = arith.constant 0 : i32
    %c0_i32_0 = arith.constant 0 : i32
    %c0_i32_1 = arith.constant 0 : i32
    return %c0_i32, %c0_i32_0 : i32, i32
  }
  func.func @transform_6(%arg0: i32) -> (i32, i32) {
    %c0_i32 = arith.constant 0 : i32
    %c0_i32_0 = arith.constant 0 : i32
    %c0_i32_1 = arith.constant 0 : i32
    return %c0_i32, %c0_i32_0 : i32, i32
  }
  func.func @transform_7(%arg0: i32) -> (i32, i32) {
    %c0_i32 = arith.constant 0 : i32
    %c0_i32_0 = arith.constant 0 : i32
    %c0_i32_1 = arith.constant 0 : i32
    return %c0_i32, %c0_i32_0 : i32, i32
  }
  func.func @transform_8(%arg0: i32) -> (i32, i32) {
    %c0_i32 = arith.constant 0 : i32
    %c0_i32_0 = arith.constant 0 : i32
    %c0_i32_1 = arith.constant 0 : i32
    return %c0_i32, %c0_i32_0 : i32, i32
  }
  func.func @transform_9(%arg0: i32) -> (i32, i32) {
    %c0_i32 = arith.constant 0 : i32
    %c0_i32_0 = arith.constant 0 : i32
    return %arg0, %c0_i32 : i32, i32
  }
}

</mosaic_0001>

<bundles_post_ra>
// kernel: tpu_custom_call.1
= control target key start
LH: loop header
LB: loop body
LE: loop exit
PB: predicated region body
PF: predicated region fallthrough
CT: control target
= control target key end

     0   :  { %14 = vsyncpa [#allocation3], 0  ;;  %s1725_s0 = inlined_call_operand.hbm [shape: bf16[8,128], index: 0, kind: input, shape index: {}]   ;;  %s1726_s1 = inlined_call_operand.hbm [shape: bf16[128,256], index: 1, kind: input, shape index: {}]   ;;  %s1727_s2 = inlined_call_operand.hbm [shape: f32[1,256], index: 2, kind: input, shape index: {}]   ;;  %s1728_s3 = inlined_call_operand.hbm [shape: bf16[256,256], index: 3, kind: input, shape index: {}]   ;;  %s1729_s4 = inlined_call_operand.vmem [shape: f32[1,256], index: 4, kind: input, shape index: {}]   ;;  %s1730_s5 = inlined_call_operand.hbm [shape: bf16[256,256], index: 5, kind: input, shape index: {}]   ;;  %s1731_s6 = inlined_call_operand.vmem [shape: f32[1,256], index: 6, kind: input, shape index: {}]   ;;  %s1732_s7 = inlined_call_operand.hbm [shape: bf16[256,128], index: 7, kind: input, shape index: {}]   ;;  %s1733_s8 = inlined_call_operand.vmem [shape: f32[1,128], index: 8, kind: input, shape index: {}]   ;;  %s1734_s9 = inlined_call_operand.hbm [shape: f32[8,128], index: 9, kind: output, shape index: {}]  }
   0x1   :  { %15 = vsyncpa [#allocation6], 0 }
   0x2   :  { %16 = vsyncpa [#allocation9], 0 }
   0x3   :  { %17 = vsyncpa [#allocation12], 0  ;;  %s34_s11 = sshll.u32 %s1726_s1, 4  ;;  %s35_s11 = int_to_ptr.hbm [resolvable:$true] %s34_s11 }
   0x4   :  { %18 = vsyncpa [#allocation4], 0  ;;  %s1625_s12 = smov [#allocation5]   ;;  %s58_s16 = sshll.u32 %s1728_s3, 4  ;;  %s59_s16 = int_to_ptr.hbm [resolvable:$true] %s58_s16 }
   0x5   :  { %s36_s13 = sshll.u32 %s1625_s12, 4  ;;  %s1626_s17 = smov 128   ;;  %s37_s13 = int_to_ptr.vmem [resolvable:$true] %s36_s13 }
   0x6   :  { %s1627_s18 = smov 8   ;;  %s1628_s19 = smov [#allocation8]  }
   0x7   :  { %42 = dma.hbm_to_vmem [thread:$0]  %s35_s11, 2048, %s37_s13, [#allocation6], %s1626_s17, %s1626_s17, %s1627_s18  }
   0x8   :  { %s60_s20 = sshll.u32 %s1628_s19, 4  ;;  %s24_s22 = sshll.u32 %s1725_s0, 4  ;;  %s61_s20 = int_to_ptr.vmem [resolvable:$true] %s60_s20  ;;  %s25_s22 = int_to_ptr.hbm [resolvable:$true] %s24_s22 }
   0x9   :  { %66 = dma.hbm_to_vmem [thread:$0]  %s59_s16, 4096, %s61_s20, [#allocation9], %s1626_s17, %s1626_s17, %s1627_s18  }
   0xa   :  { %s48_s24 = sshll.u32 %s1727_s2, 4  ;;  %s1629_s25 = smov [#allocation2]   ;;  %s49_s24 = int_to_ptr.hbm [resolvable:$true] %s48_s24 }
   0xb   :  { %s26_s26 = sshll.u32 %s1629_s25, 4  ;;  %s1630_s27 = smov [#allocation7]   ;;  %s27_s26 = int_to_ptr.vmem [resolvable:$true] %s26_s26 }
   0xc   :  { %29 = dma.hbm_to_vmem [thread:$0]  %s25_s22, 64, %s27_s26, [#allocation3]  }
   0xd   :  { %s50_s28 = sshll.u32 %s1630_s27, 4  ;;  %s73_s0 = sshll.u32 %s1730_s5, 4  ;;  %s51_s28 = int_to_ptr.vmem [resolvable:$true] %s50_s28  ;;  %s74_s0 = int_to_ptr.hbm [resolvable:$true] %s73_s0 }
   0xe   :  { %53 = dma.hbm_to_vmem [thread:$0]  %s49_s24, 32, %s51_s28, [#allocation6]  }
   0xf   :  { %s88_s12 = sshll.u32 %s1732_s7, 4  ;;  %s1631_s13 = smov [#allocation10]   ;;  %s89_s12 = int_to_ptr.hbm [resolvable:$true] %s88_s12 }
  0x10   :  { %s75_s2 = sshll.u32 %s1631_s13, 4  ;;  %s1632_s14 = smov [#allocation11]   ;;  %s76_s2 = int_to_ptr.vmem [resolvable:$true] %s75_s2 }
  0x11   :  { %81 = dma.hbm_to_vmem [thread:$0]  %s74_s0, 4096, %s76_s2, [#allocation9], %s1626_s17, %s1626_s17, %s1627_s18  }
  0x12   :  { %s90_s15 = sshll.u32 %s1632_s14, 4  ;;  %s1633_s16 = smov 64   ;;  %s91_s15 = int_to_ptr.vmem [resolvable:$true] %s90_s15 }
  0x13   :  { %s1634_s5 = smov 4  }
  0x14   :  { %96 = dma.hbm_to_vmem [thread:$0]  %s89_s12, 2048, %s91_s15, [#allocation12], %s1633_s16, %s1633_s16, %s1634_s5  }
  0x15   :  { %1615 = dma.done.wait [#allocation3], 64  }
  0x16   :  { %1616 = vsyncadd [#allocation3], 4294967232 }
  0x17   :  { %1617 = dma.done.wait [#allocation6], 2080  }
  0x18   :  { %1618 = vsyncadd [#allocation6], 4294965216 }
  0x19   :  { %1619 = dma.done.wait [#allocation9], 8192  }
  0x1a   :  { %1620 = vsyncadd [#allocation9], 4294959104 }
  0x1b   :  { %1621 = dma.done.wait [#allocation12], 2048  }
  0x1c   :  { %1622 = vsyncadd [#allocation12], 4294965248  ;;  %v1001_v0 = vld [vmem:[#allocation5 + $0x70] sm:$0xf]  ;;  %v1342_v1 = vld [vmem:[#allocation5 + $0x74] sm:$0xf0] }
  0x1d   :  { %v1341_v2 = vld [vmem:[#allocation5 + $0x74] sm:$0xf]  ;;  %v1002_v3 = vor.u32 %v1342_v1, %v1001_v0  ;;  %v1003_v4 = vld [vmem:[#allocation5 + $0x78] sm:$0xf0]  ;;  %v993_v5 = vld [vmem:[#allocation5 + $0x60] sm:$0xf] }
  0x1e   :  { %v1340_v6 = vld [vmem:[#allocation5 + $0x64] sm:$0xf0]  ;;  %v1006_v7 = vor.u32 %v1341_v2, %v1003_v4  ;;  %v1339_v8 = vld [vmem:[#allocation5 + $0x64] sm:$0xf]  ;;  %v995_v9 = vld [vmem:[#allocation5 + $0x68] sm:$0xf0] }
  0x1f   :  { %226 = vmatpush.bf16.msra.mxu0 %v1002_v3  ;;  %v994_v10 = vor.u32 %v1340_v6, %v993_v5  ;;  %v998_v11 = vor.u32 %v1339_v8, %v995_v9  ;;  %v985_v12 = vld [vmem:[#allocation5 + $0x50] sm:$0xf]  ;;  %v1338_v13 = vld [vmem:[#allocation5 + $0x54] sm:$0xf0]  ;;  %v1337_v14 = vld [vmem:[#allocation5 + $0x54] sm:$0xf] }
  0x20   :  { %239 = vmatpush.bf16.msra.mxu1 %v1006_v7  ;;  %v987_v15 = vld [vmem:[#allocation5 + $0x58] sm:$0xf0]  ;;  %v986_v16 = vor.u32 %v1338_v13, %v985_v12  ;;  %v977_v18 = vld [vmem:[#allocation5 + $0x40] sm:$0xf]  ;;  %v1336_v19 = vld [vmem:[#allocation5 + $0x44] sm:$0xf0] }
  0x21   :  { %v990_v17 = vor.u32 %v1337_v14, %v987_v15  ;;  %v1335_v20 = vld [vmem:[#allocation5 + $0x44] sm:$0xf]  ;;  %v979_v21 = vld [vmem:[#allocation5 + $0x48] sm:$0xf0]  ;;  %v978_v22 = vor.u32 %v1336_v19, %v977_v18  ;;  %v1065_v23 = vld [vmem:[#allocation8 + $0x70] sm:$0xf] }
  0x22   :  { %v1358_v24 = vld [vmem:[#allocation8 + $0x74] sm:$0xf0]  ;;  %v1129_v25 = vld [vmem:[#allocation8 + $0xf0] sm:$0xf]  ;;  %v982_v26 = vor.u32 %v1335_v20, %v979_v21  ;;  %v1057_v34 = vld [vmem:[#allocation8 + $0x60] sm:$0xf] }
  0x23   :  { %227 = vmatpush.bf16.msra.mxu0 %v994_v10  ;;  %v969_v27 = vld [vmem:[#allocation5 + $0x30] sm:$0xf]  ;;  %v1334_v28 = vld [vmem:[#allocation5 + $0x34] sm:$0xf0]  ;;  %v1066_v29 = vor.u32 %v1358_v24, %v1065_v23  ;;  %v1333_v31 = vld [vmem:[#allocation5 + $0x34] sm:$0xf] }
  0x24   :  { %240 = vmatpush.bf16.msra.mxu1 %v998_v11  ;;  %v1374_v30 = vld [vmem:[#allocation8 + $0xf4] sm:$0xf0]  ;;  %v1356_v35 = vld [vmem:[#allocation8 + $0x64] sm:$0xf0]  ;;  %v1121_v36 = vld [vmem:[#allocation8 + $0xe0] sm:$0xf]  ;;  %v970_v38 = vor.u32 %v1334_v28, %v969_v27 }
  0x25   :  { %v971_v32 = vld [vmem:[#allocation5 + $0x38] sm:$0xf0]  ;;  %v1130_v33 = vor.u32 %v1374_v30, %v1129_v25  ;;  %454 = vmatpush.bf16.msra.mxu2 %v1066_v29  ;;  %v1372_v37 = vld [vmem:[#allocation8 + $0xe4] sm:$0xf0]  ;;  %v961_v39 = vld [vmem:[#allocation5 + $0x20] sm:$0xf]  ;;  %v1058_v41 = vor.u32 %v1356_v35, %v1057_v34 }
  0x26   :  { %v1332_v40 = vld [vmem:[#allocation5 + $0x24] sm:$0xf0]  ;;  %v1122_v42 = vor.u32 %v1372_v37, %v1121_v36  ;;  %v974_v43 = vor.u32 %v1333_v31, %v971_v32  ;;  %v1331_v44 = vld [vmem:[#allocation5 + $0x24] sm:$0xf]  ;;  %v1049_v45 = vld [vmem:[#allocation8 + $0x50] sm:$0xf] }
  0x27   :  { %228 = vmatpush.bf16.msra.mxu0 %v986_v16  ;;  %467 = vmatpush.bf16.msra.mxu3 %v1130_v33  ;;  %v1354_v46 = vld [vmem:[#allocation8 + $0x54] sm:$0xf0]  ;;  %v963_v47 = vld [vmem:[#allocation5 + $0x28] sm:$0xf0]  ;;  %v1113_v48 = vld [vmem:[#allocation8 + $0xd0] sm:$0xf]  ;;  %v962_v51 = vor.u32 %v1332_v40, %v961_v39 }
  0x28   :  { %241 = vmatpush.bf16.msra.mxu1 %v990_v17  ;;  %v1370_v49 = vld [vmem:[#allocation8 + $0xd4] sm:$0xf0]  ;;  %v1050_v50 = vor.u32 %v1354_v46, %v1049_v45  ;;  %v953_v52 = vld [vmem:[#allocation5 + $0x10] sm:$0xf]  ;;  %v1041_v54 = vld [vmem:[#allocation8 + $0x40] sm:$0xf]  ;;  %v966_v56 = vor.u32 %v1331_v44, %v963_v47 }
  0x29   :  { %455 = vmatpush.bf16.msra.mxu2 %v1058_v41  ;;  %v1114_v53 = vor.u32 %v1370_v49, %v1113_v48  ;;  %v1352_v55 = vld [vmem:[#allocation8 + $0x44] sm:$0xf0]  ;;  %v1330_v57 = vld [vmem:[#allocation5 + $0x14] sm:$0xf0]  ;;  %v1105_v58 = vld [vmem:[#allocation8 + $0xc0] sm:$0xf] }
  0x2a   :  { %v1368_v59 = vld [vmem:[#allocation8 + $0xc4] sm:$0xf0]  ;;  %v1329_v60 = vld [vmem:[#allocation5 + $0x14] sm:$0xf]  ;;  %v955_v61 = vld [vmem:[#allocation5 + $0x18] sm:$0xf0]  ;;  %v1042_v0 = vor.u32 %v1352_v55, %v1041_v54  ;;  %v954_v1 = vor.u32 %v1330_v57, %v953_v52 }
  0x2b   :  { %229 = vmatpush.bf16.msra.mxu0 %v978_v22  ;;  %468 = vmatpush.bf16.msra.mxu3 %v1122_v42  ;;  %v945_v62 = vld [vmem:[#allocation5] sm:$0xf]  ;;  %v1328_v63 = vld [vmem:[#allocation5 + $0x4] sm:$0xf0]  ;;  %v1327_v2 = vld [vmem:[#allocation5 + $0x4] sm:$0xf]  ;;  %v1106_v3 = vor.u32 %v1368_v59, %v1105_v58  ;;  %v958_v6 = vor.u32 %v1329_v60, %v955_v61 }
  0x2c   :  { %242 = vmatpush.bf16.msra.mxu1 %v982_v26  ;;  %v1033_v4 = vld [vmem:[#allocation8 + $0x30] sm:$0xf]  ;;  %v1350_v5 = vld [vmem:[#allocation8 + $0x34] sm:$0xf0]  ;;  %v947_v9 = vld [vmem:[#allocation5 + $0x8] sm:$0xf0]  ;;  %v946_v15 = vor.u32 %v1328_v63, %v945_v62 }
  0x2d   :  { %456 = vmatpush.bf16.msra.mxu2 %v1050_v50  ;;  %v1097_v7 = vld [vmem:[#allocation8 + $0xb0] sm:$0xf]  ;;  %v1366_v8 = vld [vmem:[#allocation8 + $0xb4] sm:$0xf0]  ;;  %v1357_v10 = vld [vmem:[#allocation8 + $0x74] sm:$0xf]  ;;  %v1034_v14 = vor.u32 %v1350_v5, %v1033_v4  ;;  %v950_v17 = vor.u32 %v1327_v2, %v947_v9 }
  0x2e   :  { %v1067_v11 = vld [vmem:[#allocation8 + $0x78] sm:$0xf0]  ;;  %v1373_v12 = vld [vmem:[#allocation8 + $0xf4] sm:$0xf]  ;;  %v1098_v16 = vor.u32 %v1366_v8, %v1097_v7  ;;  %v1355_v20 = vld [vmem:[#allocation8 + $0x64] sm:$0xf] }
  0x2f   :  { %230 = vmatpush.bf16.msra.mxu0 %v970_v38  ;;  %469 = vmatpush.bf16.msra.mxu3 %v1114_v53  ;;  %v1131_v13 = vld [vmem:[#allocation8 + $0xf8] sm:$0xf0]  ;;  %v1070_v18 = vor.u32 %v1357_v10, %v1067_v11  ;;  %v1059_v21 = vld [vmem:[#allocation8 + $0x68] sm:$0xf0]  ;;  %v1371_v22 = vld [vmem:[#allocation8 + $0xe4] sm:$0xf] }
  0x30   :  { %243 = vmatpush.bf16.msra.mxu1 %v974_v43  ;;  %v1134_v19 = vor.u32 %v1373_v12, %v1131_v13  ;;  %v1123_v23 = vld [vmem:[#allocation8 + $0xe8] sm:$0xf0]  ;;  %v123_v24 = vld [vmem:[#allocation2] sm:$0xf]  ;;  %v1062_v25 = vor.u32 %v1355_v20, %v1059_v21  ;;  %v1353_v27 = vld [vmem:[#allocation8 + $0x54] sm:$0xf] }
  0x31   :  { %457 = vmatpush.bf16.msra.mxu2 %v1042_v0  ;;  %v1126_v26 = vor.u32 %v1371_v22, %v1123_v23  ;;  %v1051_v28 = vld [vmem:[#allocation8 + $0x58] sm:$0xf0]  ;;  %v1369_v29 = vld [vmem:[#allocation8 + $0xd4] sm:$0xf]  ;;  %v1351_v33 = vld [vmem:[#allocation8 + $0x44] sm:$0xf] }
  0x32   :  { %v1115_v30 = vld [vmem:[#allocation8 + $0xd8] sm:$0xf0]  ;;  %v1054_v31 = vor.u32 %v1353_v27, %v1051_v28  ;;  %v1043_v34 = vld [vmem:[#allocation8 + $0x48] sm:$0xf0]  ;;  %v1367_v35 = vld [vmem:[#allocation8 + $0xc4] sm:$0xf] }
  0x33   :  { %231 = vmatpush.bf16.msra.mxu0 %v962_v51  ;;  %470 = vmatpush.bf16.msra.mxu3 %v1106_v3  ;;  %v1118_v32 = vor.u32 %v1369_v29, %v1115_v30  ;;  %v1107_v36 = vld [vmem:[#allocation8 + $0xc8] sm:$0xf0]  ;;  %v1046_v37 = vor.u32 %v1351_v33, %v1043_v34  ;;  %v1349_v39 = vld [vmem:[#allocation8 + $0x34] sm:$0xf]  ;;  %v1035_v40 = vld [vmem:[#allocation8 + $0x38] sm:$0xf0] }
  0x34   :  { %244 = vmatpush.bf16.msra.mxu1 %v966_v56  ;;  %v1110_v38 = vor.u32 %v1367_v35, %v1107_v36  ;;  %v1365_v41 = vld [vmem:[#allocation8 + $0xb4] sm:$0xf]  ;;  %v1099_v42 = vld [vmem:[#allocation8 + $0xb8] sm:$0xf0]  ;;  %v1038_v43 = vor.u32 %v1349_v39, %v1035_v40  ;;  %v1025_v45 = vld [vmem:[#allocation8 + $0x20] sm:$0xf] }
  0x35   :  { %458 = vmatpush.bf16.msra.mxu2 %v1034_v14  ;;  %v1102_v44 = vor.u32 %v1365_v41, %v1099_v42  ;;  %v1348_v46 = vld [vmem:[#allocation8 + $0x24] sm:$0xf0]  ;;  %v1089_v47 = vld [vmem:[#allocation8 + $0xa0] sm:$0xf]  ;;  %v1347_v50 = vld [vmem:[#allocation8 + $0x24] sm:$0xf] }
  0x36   :  { %v1026_v48 = vor.u32 %v1348_v46, %v1025_v45  ;;  %v1364_v49 = vld [vmem:[#allocation8 + $0xa4] sm:$0xf0]  ;;  %v1027_v52 = vld [vmem:[#allocation8 + $0x28] sm:$0xf0]  ;;  %v1363_v53 = vld [vmem:[#allocation8 + $0xa4] sm:$0xf] }
  0x37   :  { %232 = vmatpush.bf16.msra.mxu0 %v954_v1  ;;  %471 = vmatpush.bf16.msra.mxu3 %v1098_v16  ;;  %v1090_v51 = vor.u32 %v1364_v49, %v1089_v47  ;;  %v1091_v54 = vld [vmem:[#allocation8 + $0xa8] sm:$0xf0]  ;;  %v1030_v55 = vor.u32 %v1347_v50, %v1027_v52  ;;  %v1017_v57 = vld [vmem:[#allocation8 + $0x10] sm:$0xf]  ;;  %v1346_v58 = vld [vmem:[#allocation8 + $0x14] sm:$0xf0] }
  0x38   :  { %245 = vmatpush.bf16.msra.mxu1 %v958_v6  ;;  %v1094_v56 = vor.u32 %v1363_v53, %v1091_v54  ;;  %v1081_v59 = vld [vmem:[#allocation8 + $0x90] sm:$0xf]  ;;  %v1018_v60 = vor.u32 %v1346_v58, %v1017_v57  ;;  %v1362_v61 = vld [vmem:[#allocation8 + $0x94] sm:$0xf0]  ;;  %v1345_v62 = vld [vmem:[#allocation8 + $0x14] sm:$0xf] }
  0x39   :  { %459 = vmatpush.bf16.msra.mxu2 %v1026_v48  ;;  %v1019_v63 = vld [vmem:[#allocation8 + $0x18] sm:$0xf0]  ;;  %v1082_v0 = vor.u32 %v1362_v61, %v1081_v59  ;;  %v1361_v2 = vld [vmem:[#allocation8 + $0x94] sm:$0xf]  ;;  %v1009_v5 = vld [vmem:[#allocation8] sm:$0xf] }
  0x3a   :  { %v1022_v1 = vor.u32 %v1345_v62, %v1019_v63  ;;  %v1083_v3 = vld [vmem:[#allocation8 + $0x98] sm:$0xf0]  ;;  %v1344_v6 = vld [vmem:[#allocation8 + $0x4] sm:$0xf0]  ;;  %v1073_v7 = vld [vmem:[#allocation8 + $0x80] sm:$0xf] }
  0x3b   :  { %233 = vmatpush.bf16.msra.mxu0 %v946_v15  ;;  %472 = vmatpush.bf16.msra.mxu3 %v1090_v51  ;;  %v1086_v4 = vor.u32 %v1361_v2, %v1083_v3  ;;  %v1010_v8 = vor.u32 %v1344_v6, %v1009_v5  ;;  %v1360_v9 = vld [vmem:[#allocation8 + $0x84] sm:$0xf0]  ;;  %v1343_v10 = vld [vmem:[#allocation8 + $0x4] sm:$0xf]  ;;  %v1011_v11 = vld [vmem:[#allocation8 + $0x8] sm:$0xf0] }
  0x3c   :  { %246 = vmatpush.bf16.msra.mxu1 %v950_v17  ;;  %v1074_v12 = vor.u32 %v1360_v9, %v1073_v7  ;;  %v1014_v13 = vor.u32 %v1343_v10, %v1011_v11  ;;  %v1359_v14 = vld [vmem:[#allocation8 + $0x84] sm:$0xf]  ;;  %v1075_v15 = vld [vmem:[#allocation8 + $0x88] sm:$0xf0]  ;;  %v1257_v17 = vld [vmem:[#allocation10 + $0xf0] sm:$0xf] }
  0x3d   :  { %460 = vmatpush.bf16.msra.mxu2 %v1018_v60  ;;  %v1078_v16 = vor.u32 %v1359_v14, %v1075_v15  ;;  %v1259_v21 = vld [vmem:[#allocation10 + $0xf8] sm:$0xf0]  ;;  %v1249_v22 = vld [vmem:[#allocation10 + $0xe0] sm:$0xf]  ;;  %v1404_v23 = vld [vmem:[#allocation10 + $0xe4] sm:$0xf0] }
  0x3e   :  { %234 = vmatmul.bf16.vlgmr.msra.gmra.mxu0 %v123_v24  ;;  %v1193_v27 = vld [vmem:[#allocation10 + $0x70] sm:$0xf]  ;;  %v1250_v28 = vor.u32 %v1404_v23, %v1249_v22  ;;  %v1390_v29 = vld [vmem:[#allocation10 + $0x74] sm:$0xf0]  ;;  %v1389_v30 = vld [vmem:[#allocation10 + $0x74] sm:$0xf] }
  0x3f   :  { %480 = vmatpush.bf16.msrb.mxu0 %v1070_v18  ;;  %247 = vmatmul.bf16.vlgmr.msra.gmra.mxu1 %v123_v24  ;;  %v1406_v18 = vld [vmem:[#allocation10 + $0xf4] sm:$0xf0]  ;;  %v1194_v33 = vor.u32 %v1390_v29, %v1193_v27  ;;  %v1241_v35 = vld [vmem:[#allocation10 + $0xd0] sm:$0xf]  ;;  %v1185_v39 = vld [vmem:[#allocation10 + $0x60] sm:$0xf] }
  0x40   :  { %493 = vmatpush.bf16.msrb.mxu1 %v1134_v19  ;;  %473 = vmatpush.bf16.msra.mxu3 %v1082_v0  ;;  %v1405_v19 = vld [vmem:[#allocation10 + $0xf4] sm:$0xf]  ;;  %v1258_v20 = vor.u32 %v1406_v18, %v1257_v17  ;;  %v1402_v36 = vld [vmem:[#allocation10 + $0xd4] sm:$0xf0]  ;;  %v1388_v40 = vld [vmem:[#allocation10 + $0x64] sm:$0xf0] }
  0x41   :  { %461 = vmatpush.bf16.msra.mxu2 %v1010_v8  ;;  %v1262_v24 = vor.u32 %v1405_v19, %v1259_v21  ;;  %v1186_v41 = vor.u32 %v1388_v40, %v1185_v39  ;;  %v1387_v42 = vld [vmem:[#allocation10 + $0x64] sm:$0xf]  ;;  %v1233_v46 = vld [vmem:[#allocation10 + $0xc0] sm:$0xf]  ;;  %v1400_v47 = vld [vmem:[#allocation10 + $0xc4] sm:$0xf0] }
  0x42   :  { %v1177_v49 = vld [vmem:[#allocation10 + $0x50] sm:$0xf]  ;;  %v1386_v50 = vld [vmem:[#allocation10 + $0x54] sm:$0xf0]  ;;  %v1385_v51 = vld [vmem:[#allocation10 + $0x54] sm:$0xf]  ;;  %v1234_v57 = vor.u32 %v1400_v47, %v1233_v46 }
  0x43   :  { %481 = vmatpush.bf16.msrb.mxu0 %v1062_v25  ;;  %v1403_v25 = vld [vmem:[#allocation10 + $0xe4] sm:$0xf]  ;;  %v1235_v53 = vld [vmem:[#allocation10 + $0xc8] sm:$0xf0]  ;;  %v1179_v54 = vld [vmem:[#allocation10 + $0x58] sm:$0xf0] }
  0x44   :  { %494 = vmatpush.bf16.msrb.mxu1 %v1126_v26  ;;  %474 = vmatpush.bf16.msra.mxu3 %v1074_v12  ;;  %v1251_v26 = vld [vmem:[#allocation10 + $0xe8] sm:$0xf0]  ;;  %v1399_v52 = vld [vmem:[#allocation10 + $0xc4] sm:$0xf]  ;;  %v1225_v59 = vld [vmem:[#allocation10 + $0xb0] sm:$0xf] }
  0x45   :  { %708 = vmatpush.bf16.msrb.mxu2 %v1194_v33  ;;  %v1238_v58 = vor.u32 %v1399_v52, %v1235_v53  ;;  %v1398_v60 = vld [vmem:[#allocation10 + $0xb4] sm:$0xf0]  ;;  %v140_v61 = vld [vmem:[#allocation7] sm:$0x3]  ;;  %v1397_v62 = vld [vmem:[#allocation10 + $0xb4] sm:$0xf] }
  0x46   :  { %v1227_v63 = vld [vmem:[#allocation10 + $0xb8] sm:$0xf0]  ;;  %v1226_v0 = vor.u32 %v1398_v60, %v1225_v59  ;;  %v143_v3 = vperm.slane %v140_v61, 1  ;;  %v1169_v14 = vld [vmem:[#allocation10 + $0x40] sm:$0xf]  ;;  %s1635_s20 = smov [#allocation13]  }
  0x47   :  { %482 = vmatpush.bf16.msrb.mxu0 %v1054_v31  ;;  %v1195_v31 = vld [vmem:[#allocation10 + $0x78] sm:$0xf0]  ;;  %v1230_v2 = vor.u32 %v1397_v62, %v1227_v63  ;;  %v1384_v15 = vld [vmem:[#allocation10 + $0x44] sm:$0xf0]  ;;  %v1171_v18 = vld [vmem:[#allocation10 + $0x48] sm:$0xf0] }
  0x48   :  { %495 = vmatpush.bf16.msrb.mxu1 %v1118_v32  ;;  %721 = vmatpush.bf16.msrb.mxu3 %v1258_v20  ;;  %v1254_v32 = vor.u32 %v1403_v25, %v1251_v26  ;;  %v1198_v34 = vor.u32 %v1389_v30, %v1195_v31  ;;  %v1170_v17 = vor.u32 %v1384_v15, %v1169_v14  ;;  %v1217_v20 = vld [vmem:[#allocation10 + $0xa0] sm:$0xf]  ;;  %v1396_v21 = vld [vmem:[#allocation10 + $0xa4] sm:$0xf0]  ;;  %v1395_v22 = vld [vmem:[#allocation10 + $0xa4] sm:$0xf] }
  0x49   :  { %709 = vmatpush.bf16.msrb.mxu2 %v1186_v41  ;;  %v1218_v23 = vor.u32 %v1396_v21, %v1217_v20  ;;  %v1161_v26 = vld [vmem:[#allocation10 + $0x30] sm:$0xf]  ;;  %v1382_v27 = vld [vmem:[#allocation10 + $0x34] sm:$0xf0]  ;;  %v1163_v30 = vld [vmem:[#allocation10 + $0x38] sm:$0xf0] }
  0x4a   :  { %v1162_v29 = vor.u32 %v1382_v27, %v1161_v26  ;;  %v1394_v33 = vld [vmem:[#allocation10 + $0x94] sm:$0xf0]  ;;  %v1380_v39 = vld [vmem:[#allocation10 + $0x24] sm:$0xf0]  ;;  %v1379_v40 = vld [vmem:[#allocation10 + $0x24] sm:$0xf] }
  0x4b   :  { %483 = vmatpush.bf16.msrb.mxu0 %v1046_v37  ;;  %v1401_v37 = vld [vmem:[#allocation10 + $0xd4] sm:$0xf]  ;;  %v1391_v46 = vld [vmem:[#allocation10 + $0x84] sm:$0xf]  ;;  %v1139_v60 = vld [vmem:[#allocation10 + $0x8] sm:$0xf0] }
  0x4c   :  { %496 = vmatpush.bf16.msrb.mxu1 %v1110_v38  ;;  %v1243_v38 = vld [vmem:[#allocation10 + $0xd8] sm:$0xf0]  ;;  %722 = vmatpush.bf16.msrb.mxu3 %v1250_v28  ;;  %v1381_v28 = vld [vmem:[#allocation10 + $0x34] sm:$0xf]  ;;  %s928_s21 = sshll.u32 %s1635_s20, 4  ;;  %s930_s3 = sshll.u32 %s1734_s9, 4  ;;  %s929_s21 = int_to_ptr.vmem [resolvable:$true] %s928_s21  ;;  %s931_s3 = int_to_ptr.hbm [resolvable:$true] %s930_s3 }
  0x4d   :  { %v1246_v48 = vor.u32 %v1401_v37, %v1243_v38  ;;  %v1166_v31 = vor.u32 %v1381_v28, %v1163_v30  ;;  %v1153_v38 = vld [vmem:[#allocation10 + $0x20] sm:$0xf]  ;;  %v1377_v52 = vld [vmem:[#allocation10 + $0x14] sm:$0xf]  ;;  %v1422_v62 = vld [vmem:[#allocation11 + $0x78] sm:$0xff] }
  0x4e   :  { %v1154_v41 = vor.u32 %v1380_v39, %v1153_v38  ;;  %v1414_v63 = vld [vmem:[#allocation11 + $0x38] sm:$0xff]  ;;  %v1417_v26 = vld [vmem:[#allocation11 + $0x50] sm:$0xff]  ;;  %v1416_v28 = vld [vmem:[#allocation11 + $0x48] sm:$0xff] }
  0x4f   :  { %484 = vmatpush.bf16.msrb.mxu0 %v1038_v43  ;;  %v1187_v43 = vld [vmem:[#allocation10 + $0x68] sm:$0xf0]  ;;  %v1410_v27 = vld [vmem:[#allocation11 + $0x18] sm:$0xff]  ;;  %v1415_v30 = vld [vmem:[#allocation11 + $0x40] sm:$0xff] }
  0x50   :  { %497 = vmatpush.bf16.msrb.mxu1 %v1102_v44  ;;  %v1242_v44 = vor.u32 %v1402_v36, %v1241_v35  ;;  %v1190_v45 = vor.u32 %v1387_v42, %v1187_v43  ;;  %v1211_v36 = vld [vmem:[#allocation10 + $0x98] sm:$0xf0]  ;;  %v1155_v42 = vld [vmem:[#allocation10 + $0x28] sm:$0xf0] }
  0x51   :  { %v1158_v43 = vor.u32 %v1379_v40, %v1155_v42 }
  0x52   :  { %723 = vmatpush.bf16.msrb.mxu3 %v1242_v44  ;;  %v1201_v44 = vld [vmem:[#allocation10 + $0x80] sm:$0xf] }
  0x53   :  { %485 = vmatpush.bf16.msrb.mxu0 %v1030_v55  ;;  %v1178_v55 = vor.u32 %v1386_v50, %v1177_v49  ;;  %v1145_v50 = vld [vmem:[#allocation10 + $0x10] sm:$0xf] }
  0x54   :  { %498 = vmatpush.bf16.msrb.mxu1 %v1094_v56  ;;  %v1182_v56 = vor.u32 %v1385_v51, %v1179_v54  ;;  %v1378_v51 = vld [vmem:[#allocation10 + $0x14] sm:$0xf0]  ;;  %v1147_v54 = vld [vmem:[#allocation10 + $0x18] sm:$0xf0] }
  0x55   :  { %710 = vmatpush.bf16.msrb.mxu2 %v1178_v55  ;;  %v1146_v53 = vor.u32 %v1378_v51, %v1145_v50  ;;  %v1150_v55 = vor.u32 %v1377_v52, %v1147_v54 }
  0x56   :  { %724 = vmatpush.bf16.msrb.mxu3 %v1234_v57  ;;  %v1376_v57 = vld [vmem:[#allocation10 + $0x4] sm:$0xf0] }
  0x57   :  { %486 = vmatpush.bf16.msrb.mxu0 %v1022_v1  ;;  %v142_v1 = vperm.slane %v140_v61, 0 }
  0x58   :  { %499 = vmatpush.bf16.msrb.mxu1 %v1086_v4 }
  0x59   :  { %711 = vmatpush.bf16.msrb.mxu2 %v1170_v17 }
  0x5a   :  { %725 = vmatpush.bf16.msrb.mxu3 %v1226_v0  ;;  %v1421_v0 = vld [vmem:[#allocation11 + $0x70] sm:$0xff] }
  0x5b   :  { %487 = vmatpush.bf16.msrb.mxu0 %v1014_v13 }
  0x5c   :  { %500 = vmatpush.bf16.msrb.mxu1 %v1078_v16  ;;  %v1383_v16 = vld [vmem:[#allocation10 + $0x44] sm:$0xf] }
  0x5d   :  { %v1174_v19 = vor.u32 %v1383_v16, %v1171_v18  ;;  %712 = vmatpush.bf16.msrb.mxu2 %v1162_v29  ;;  %v1409_v29 = vld [vmem:[#allocation11 + $0x10] sm:$0xff] }
  0x5e   :  { %726 = vmatpush.bf16.msrb.mxu3 %v1218_v23  ;;  %v1412_v23 = vld [vmem:[#allocation11 + $0x28] sm:$0xff] }
  0x5f   :  { %734 = vmatpush.bf16.msra.mxu0 %v1198_v34  ;;  %v1393_v34 = vld [vmem:[#allocation10 + $0x94] sm:$0xf] }
  0x60   :  { %747 = vmatpush.bf16.msra.mxu1 %v1262_v24  ;;  %v1219_v24 = vld [vmem:[#allocation10 + $0xa8] sm:$0xf0]  ;;  %v1214_v37 = vor.u32 %v1393_v34, %v1211_v36  ;;  %v542_v34 = vld [vmem:[%s1731_s6] sm:$0x3] }
  0x61   :  { %v1222_v25 = vor.u32 %v1395_v22, %v1219_v24  ;;  %713 = vmatpush.bf16.msrb.mxu2 %v1154_v41  ;;  %v1419_v22 = vld [vmem:[#allocation11 + $0x60] sm:$0xff]  ;;  %v1418_v24 = vld [vmem:[#allocation11 + $0x58] sm:$0xff]  ;;  %v544_v41 = vperm.slane %v542_v34, 0 }
  0x63   :  { %735 = vmatpush.bf16.msra.mxu0 %v1190_v45  ;;  %v1392_v45 = vld [vmem:[#allocation10 + $0x84] sm:$0xf0] }
  0x64   :  { %748 = vmatpush.bf16.msra.mxu1 %v1254_v32  ;;  %v1209_v32 = vld [vmem:[#allocation10 + $0x90] sm:$0xf]  ;;  %v1202_v47 = vor.u32 %v1392_v45, %v1201_v44 }
  0x65   :  { %v1210_v35 = vor.u32 %v1394_v33, %v1209_v32  ;;  %714 = vmatpush.bf16.msrb.mxu2 %v1146_v53  ;;  %v1407_v32 = vld [vmem:[#allocation11] sm:$0xff]  ;;  %v1434_v53 = vld [vmem:[%s1733_s8] ss:$0 sm:$0xff] }
  0x67   :  { %736 = vmatpush.bf16.msra.mxu0 %v1182_v56  ;;  %727 = vmatpush.bf16.msrb.mxu3 %v1210_v35  ;;  %v1137_v56 = vld [vmem:[#allocation10] sm:$0xf]  ;;  %v545_v35 = vperm.slane %v542_v34, 1 }
  0x68   :  { %749 = vmatpush.bf16.msra.mxu1 %v1246_v48  ;;  %v1203_v48 = vld [vmem:[#allocation10 + $0x88] sm:$0xf0]  ;;  %v1138_v59 = vor.u32 %v1376_v57, %v1137_v56 }
  0x69   :  { %v1206_v49 = vor.u32 %v1391_v46, %v1203_v48 }
  0x6a   :  { %715 = vmatpush.bf16.msrb.mxu2 %v1138_v59 }
  0x6b   :  { %737 = vmatpush.bf16.msra.mxu0 %v1174_v19  ;;  %728 = vmatpush.bf16.msrb.mxu3 %v1202_v47 }
  0x6c   :  { %750 = vmatpush.bf16.msra.mxu1 %v1238_v58  ;;  %v1375_v58 = vld [vmem:[#allocation10 + $0x4] sm:$0xf] }
  0x6d   :  { %v1142_v61 = vor.u32 %v1375_v58, %v1139_v60 }
  0x6f   :  { %738 = vmatpush.bf16.msra.mxu0 %v1166_v31  ;;  %v1408_v31 = vld [vmem:[#allocation11 + $0x8] sm:$0xff] }
  0x70   :  { %751 = vmatpush.bf16.msra.mxu1 %v1230_v2  ;;  %v288_v2 = vld [vmem:[%s1729_s4] sm:$0x3] }
  0x73   :  { %739 = vmatpush.bf16.msra.mxu0 %v1158_v43 }
  0x74   :  { %752 = vmatpush.bf16.msra.mxu1 %v1222_v25  ;;  %v1411_v25 = vld [vmem:[#allocation11 + $0x20] sm:$0xff] }
  0x77   :  { %740 = vmatpush.bf16.msra.mxu0 %v1150_v55 }
  0x78   :  { %753 = vmatpush.bf16.msra.mxu1 %v1214_v37 }
  0x7b   :  { %741 = vmatpush.bf16.msra.mxu0 %v1142_v61 }
  0x7c   :  { %754 = vmatpush.bf16.msra.mxu1 %v1206_v49 }
  0xbb   :  { %v235_v4 = vpop.f32.mrf.mxu0 }
  0xbc   :  { %v236_v5 = vadd.f32 %v235_v4, %v142_v1  ;;  %v248_v6 = vpop.f32.mrf.mxu1  ;;  %v1413_v1 = vld [vmem:[#allocation11 + $0x30] sm:$0xff]  ;;  %v291_v4 = vperm.slane %v288_v2, 1 }
  0xbd   :  { %v249_v7 = vadd.f32 %v248_v6, %v143_v3  ;;  %v1420_v3 = vld [vmem:[#allocation11 + $0x68] sm:$0xff] }
  0xbe   :  { %1435 = vtanh.f32 %v236_v5 }
  0xbf   :  { %1437 = vtanh.f32 %v249_v7 }
  0xc3   :  { %v237_v8 = vpop.f32.mrf.mxu0 }
  0xc4   :  { %v1436_v9 = vpop.eup %1435  ;;  %v250_v10 = vpop.f32.mrf.mxu1 }
  0xc5   :  { %v1438_v11 = vpop.eup %1437  ;;  %v254_v12 = vpack.c.bf16 %v1436_v9, %v1436_v9  ;;  %v290_v9 = vperm.slane %v288_v2, 0 }
  0xc6   :  { %v255_v13 = vpack.c.bf16 %v1438_v11, %v1438_v11 }
  0xc7   :  { %462 = vmatmul.bf16.vlgmr.msra.gmra.mxu2 %v254_v12  ;;  %488 = vmatmul.bf16.vlgmr.msrb.gmra.mxu0 %v254_v12 }
  0xc8   :  { %475 = vmatmul.bf16.vlgmr.msra.gmra.mxu3 %v255_v13  ;;  %501 = vmatmul.bf16.vlgmr.msrb.gmra.mxu1 %v255_v13 }
  0xc9   :  { %909 = vmatpush.bf16.msra.mxu3 %v1422_v62  ;;  %896 = vmatpush.bf16.msra.mxu2 %v1414_v63 }
  0xcd   :  { %910 = vmatpush.bf16.msra.mxu3 %v1421_v0  ;;  %897 = vmatpush.bf16.msra.mxu2 %v1413_v1 }
  0xd1   :  { %911 = vmatpush.bf16.msra.mxu3 %v1420_v3  ;;  %898 = vmatpush.bf16.msra.mxu2 %v1412_v23 }
  0xd5   :  { %912 = vmatpush.bf16.msra.mxu3 %v1419_v22  ;;  %899 = vmatpush.bf16.msra.mxu2 %v1411_v25 }
  0xd9   :  { %913 = vmatpush.bf16.msra.mxu3 %v1418_v24  ;;  %900 = vmatpush.bf16.msra.mxu2 %v1410_v27 }
  0xdd   :  { %914 = vmatpush.bf16.msra.mxu3 %v1417_v26  ;;  %901 = vmatpush.bf16.msra.mxu2 %v1409_v29 }
  0xe1   :  { %915 = vmatpush.bf16.msra.mxu3 %v1416_v28  ;;  %902 = vmatpush.bf16.msra.mxu2 %v1408_v31 }
  0xe5   :  { %916 = vmatpush.bf16.msra.mxu3 %v1415_v30  ;;  %903 = vmatpush.bf16.msra.mxu2 %v1407_v32 }
 0x144   :  { %v489_v5 = vpop.f32.mrf.mxu0 }
 0x145   :  { %v490_v6 = vadd.f32 %v489_v5, %v291_v4  ;;  %v502_v7 = vpop.f32.mrf.mxu1 }
 0x147   :  { %v503_v8 = vadd.f32 %v502_v7, %v490_v6 }
 0x149   :  { %1439 = vtanh.f32 %v503_v8 }
 0x14a   :  { %v463_v10 = vpop.f32.mrf.mxu2 }
 0x14b   :  { %v464_v11 = vadd.f32 %v463_v10, %v290_v9  ;;  %v476_v12 = vpop.f32.mrf.mxu3 }
 0x14c   :  { %v491_v13 = vpop.f32.mrf.mxu0 }
 0x14d   :  { %v477_v14 = vadd.f32 %v476_v12, %v464_v11  ;;  %v504_v15 = vpop.f32.mrf.mxu1 }
 0x14f   :  { %v1440_v16 = vpop.eup %1439  ;;  %1441 = vtanh.f32 %v477_v14 }
 0x150   :  { %v509_v17 = vpack.c.bf16 %v1440_v16, %v1440_v16 }
 0x152   :  { %v465_v18 = vpop.f32.mrf.mxu2  ;;  %729 = vmatmul.bf16.vlgmr.msrb.gmra.mxu3 %v509_v17  ;;  %755 = vmatmul.bf16.vlgmr.msra.gmra.mxu1 %v509_v17 }
 0x153   :  { %v478_v19 = vpop.f32.mrf.mxu3 }
 0x155   :  { %v1442_v20 = vpop.eup %1441 }
 0x156   :  { %v508_v21 = vpack.c.bf16 %v1442_v20, %v1442_v20 }
 0x158   :  { %716 = vmatmul.bf16.vlgmr.msrb.gmra.mxu2 %v508_v21  ;;  %742 = vmatmul.bf16.vlgmr.msra.gmra.mxu0 %v508_v21 }
 0x1cf   :  { %v756_v33 = vpop.f32.mrf.mxu1 }
 0x1d5   :  { %v730_v36 = vpop.f32.mrf.mxu3  ;;  %v743_v37 = vpop.f32.mrf.mxu0 }
 0x1d6   :  { %v744_v38 = vadd.f32 %v743_v37, %v545_v35 }
 0x1d7   :  { %v758_v39 = vpop.f32.mrf.mxu1 }
 0x1d8   :  { %v757_v40 = vadd.f32 %v756_v33, %v744_v38 }
 0x1da   :  { %1443 = vtanh.f32 %v757_v40 }
 0x1db   :  { %v717_v42 = vpop.f32.mrf.mxu2 }
 0x1dc   :  { %v718_v43 = vadd.f32 %v717_v42, %v544_v41 }
 0x1dd   :  { %v732_v44 = vpop.f32.mrf.mxu3  ;;  %v745_v45 = vpop.f32.mrf.mxu0 }
 0x1de   :  { %v731_v46 = vadd.f32 %v730_v36, %v718_v43 }
 0x1e0   :  { %v1444_v47 = vpop.eup %1443  ;;  %1445 = vtanh.f32 %v731_v46 }
 0x1e1   :  { %v763_v48 = vpack.c.bf16 %v1444_v47, %v1444_v47 }
 0x1e3   :  { %v719_v49 = vpop.f32.mrf.mxu2  ;;  %917 = vmatmul.bf16.vlgmr.msra.gmra.mxu3 %v763_v48 }
 0x1e6   :  { %v1446_v50 = vpop.eup %1445 }
 0x1e7   :  { %v762_v51 = vpack.c.bf16 %v1446_v50, %v1446_v50 }
 0x1e9   :  { %904 = vmatmul.bf16.vlgmr.msra.gmra.mxu2 %v762_v51 }
 0x266   :  { %v918_v52 = vpop.f32.mrf.mxu3 }
 0x26c   :  { %v905_v54 = vpop.f32.mrf.mxu2 }
 0x26d   :  { %v906_v55 = vadd.f32 %v1434_v53, %v905_v54 }
 0x26e   :  { %v920_v56 = vpop.f32.mrf.mxu3 }
 0x26f   :  { %v919_v57 = vadd.f32 %v918_v52, %v906_v55 }
 0x271   :  { %922 = vst [vmem:[#allocation13] sm:$0xff] %v919_v57 }
 0x272   :  { %933 = dma.vmem_to_hbm [thread:$0]  %s929_s21, 128, %s931_s3, [#allocation4]  }
 0x274   :  { %v907_v58 = vpop.f32.mrf.mxu2 }
 0x275   :  { %1623 = dma.done.wait [#allocation4], 128  }
 0x276   :  { %1624 = vsyncadd [#allocation4], 4294967168 }
 0x277   :  { %938 = vsyncpa [#allocation3], 1 }
 0x278   :  { %939 = vsyncpa [#allocation6], 1 }
 0x279   :  { %940 = vsyncpa [#allocation9], 1 }
 0x27a   :  { %941 = vsyncpa [#allocation12], 1 }
 0x27b   :  { %942 = vsyncpa [#allocation4], 1 }

</bundles_post_ra>
